<compile_context>
chip_gen: v7x
topology: tpu7x:2x2x1
jax: 0.10.0
libtpu: 0.0.40
codegen_flags: <defaults>
</compile_context>

<pallas_src>
import jax
import jax.numpy as jnp
from jax.experimental import pallas as pl
from jax.experimental.pallas import tpu as pltpu


FEATURES = 784
HIDDEN = 20
CLASSES = 10


def _mlp_kernel(x_ref, w1_ref, b1_ref, w2_ref, b2_ref, o_ref):
    # Cast the streamed f32 tile (and the tiny resident w1) to bf16 in-kernel;
    # the VPU cast is free here and the MXU accumulates in f32.
    x = x_ref[...].astype(jnp.bfloat16)
    w1 = w1_ref[...].astype(jnp.bfloat16)

    # Hidden layer: (TB, 784) @ (784, 20) -> f32, + (1, 20), ReLU.
    h = jnp.dot(x, w1, preferred_element_type=jnp.float32)
    h = jnp.maximum(h + b1_ref[...], 0.0)

    # Output layer: (TB, 20) f32 @ (20, 10) f32 + (1, 10).
    logits = jnp.dot(h, w2_ref[...], preferred_element_type=jnp.float32) + b2_ref[...]

    # log_softmax along dim=1 (numerically stable, all in f32).
    m = jnp.max(logits, axis=1, keepdims=True)
    shifted = logits - m
    lse = jnp.log(jnp.sum(jnp.exp(shifted), axis=1, keepdims=True))
    o_ref[...] = (shifted - lse).astype(o_ref.dtype)


def _choose_tb(batch):
    """Pick a batch tile: >=4 grid steps when possible, sublane-aligned, <=1024."""
    if batch <= 32:
        return batch  # single full-dim block (legal for any size)
    t = pl.cdiv(batch, 4)                      # aim for >= 4 grid steps (v7x megacore)
    t = ((min(t, 1024) + 7) // 8) * 8          # multiple of 8, v5e-VMEM-safe cap
    return min(t, batch)


def nn_forward(images, w1, b1, w2, b2, *, tb=None):
    """Forward pass matching NN.forward: view(-1, 784) -> ReLU(Linear) -> log_softmax(Linear)."""
    x = images.reshape(-1, FEATURES).astype(jnp.float32)  # free reshape, no HBM copy
    batch = x.shape[0]

    # Normalize the tile size so every block shape is legal:
    #  * tb >= batch  -> use the full batch dim (always allowed)
    #  * tb <  batch  -> round up to a multiple of 8 (sublane aligned)
    if tb is None:
        tb = _choose_tb(batch)
    if tb >= batch:
        tb = batch
    else:
        tb = min(((tb + 7) // 8) * 8, batch)

    num_tiles = pl.cdiv(batch, tb)

    w1f = w1.astype(jnp.float32)
    b1r = b1.astype(jnp.float32).reshape(1, HIDDEN)
    w2f = w2.astype(jnp.float32)
    b2r = b2.astype(jnp.float32).reshape(1, CLASSES)

    param_bytes = 4 * (FEATURES * HIDDEN + HIDDEN + HIDDEN * CLASSES + CLASSES)
    cost = pl.CostEstimate(
        flops=2 * batch * (FEATURES * HIDDEN + HIDDEN * CLASSES),
        transcendentals=batch * (CLASSES + 1),
        bytes_accessed=4 * batch * (FEATURES + CLASSES) + param_bytes,
    )

    out = pl.pallas_call(
        _mlp_kernel,
        out_shape=jax.ShapeDtypeStruct((batch, CLASSES), jnp.float32),
        grid=(num_tiles,),
        in_specs=[
            pl.BlockSpec((tb, FEATURES), lambda i: (i, 0)),       # x: streamed f32
            pl.BlockSpec((FEATURES, HIDDEN), lambda i: (0, 0)),   # w1: resident
            pl.BlockSpec((1, HIDDEN), lambda i: (0, 0)),          # b1: resident
            pl.BlockSpec((HIDDEN, CLASSES), lambda i: (0, 0)),    # w2: resident
            pl.BlockSpec((1, CLASSES), lambda i: (0, 0)),         # b2: resident
        ],
        out_specs=pl.BlockSpec((tb, CLASSES), lambda i: (i, 0)),
        compiler_params=pltpu.CompilerParams(
            dimension_semantics=("parallel",),
        ),
        cost_estimate=cost,
    )(x, w1f, b1r, w2f, b2r)

    return out


def init_params(key):
    """Deterministic init matching nn.Linear shapes (uniform +/- 1/sqrt(fan_in))."""
    k1, k2, k3, k4 = jax.random.split(key, 4)
    bound1 = 1.0 / jnp.sqrt(784.0)
    bound2 = 1.0 / jnp.sqrt(20.0)
    w1 = jax.random.uniform(k1, (FEATURES, HIDDEN), jnp.float32, -bound1, bound1)
    b1 = jax.random.uniform(k2, (HIDDEN,), jnp.float32, -bound1, bound1)
    w2 = jax.random.uniform(k3, (HIDDEN, CLASSES), jnp.float32, -bound2, bound2)
    b2 = jax.random.uniform(k4, (CLASSES,), jnp.float32, -bound2, bound2)
    return w1, b1, w2, b2


def _reference_forward(images, w1, b1, w2, b2):
    """Pure-JAX reference (f32) for correctness comparison."""
    x = images.reshape(-1, FEATURES).astype(jnp.float32)
    h = jnp.maximum(x @ w1 + b1, 0.0)
    logits = h @ w2 + b2
    return jax.nn.log_softmax(logits, axis=1)


if __name__ == "__main__":
    key = jax.random.PRNGKey(0)
    k_params, k_x = jax.random.split(key)
    w1, b1, w2, b2 = init_params(k_params)

    # Small MNIST-like batch: (B, 1, 28, 28) NCHW.
    images = jax.random.normal(k_x, (2, 1, 28, 28), jnp.float32)

    out = nn_forward(images, w1, b1, w2, b2)
    jax.block_until_ready(out)

    # Sanity checks: shape, log-softmax normalization, and agreement with the
    # pure-JAX f32 reference (loose tolerance because x/w1 go bf16 on the MXU).
    assert out.shape == (2, 10)
    row_sums = jnp.sum(jnp.exp(out), axis=1)
    assert bool(jnp.all(jnp.abs(row_sums - 1.0) < 1e-4))

    ref = _reference_forward(images, w1, b1, w2, b2)
    assert bool(jnp.all(jnp.abs(out - ref) < 5e-2))

    # Ragged-tile path (batch % tb != 0): exercises masked boundary blocks
    # without any wrapper-side batch padding.
    images2 = jax.random.normal(jax.random.PRNGKey(1), (37, 1, 28, 28), jnp.float32)
    out2 = nn_forward(images2, w1, b1, w2, b2, tb=16)
    jax.block_until_ready(out2)
    assert out2.shape == (37, 10)
    ref2 = _reference_forward(images2, w1, b1, w2, b2)
    assert bool(jnp.all(jnp.abs(out2 - ref2) < 5e-2))

    print("KERNEL_OK")
</pallas_src>

<mosaic_0001>
module attributes {stable_mosaic.version = 11 : i64} {
  func.func @_mlp_kernel(%arg0: i32, %arg1: memref<2x784xf32, #tpu.memory_space<vmem>>, %arg2: memref<784x20xf32, #tpu.memory_space<vmem>>, %arg3: memref<1x20xf32, #tpu.memory_space<vmem>>, %arg4: memref<20x10xf32, #tpu.memory_space<vmem>>, %arg5: memref<1x10xf32, #tpu.memory_space<vmem>>, %arg6: memref<2x10xf32, #tpu.memory_space<vmem>>) attributes {dimension_semantics = [#tpu.dimension_semantics<parallel>], iteration_bounds = array<i64: 1>, scalar_prefetch = 0 : i64, scratch_operands = 0 : i64, tpu.core_type = #tpu.core_type<tc>, window_params = [{transform_indices = @transform_0, window_bounds = array<i64: 2, 784>}, {pipeline_mode = #tpu.pipeline_mode<synchronous>, transform_indices = @transform_1, window_bounds = array<i64: 784, 20>}, {pipeline_mode = #tpu.pipeline_mode<synchronous>, transform_indices = @transform_2, window_bounds = array<i64: 1, 20>}, {pipeline_mode = #tpu.pipeline_mode<synchronous>, transform_indices = @transform_3, window_bounds = array<i64: 20, 10>}, {pipeline_mode = #tpu.pipeline_mode<synchronous>, transform_indices = @transform_4, window_bounds = array<i64: 1, 10>}, {transform_indices = @transform_5, window_bounds = array<i64: 2, 10>}]} {
    %c0 = arith.constant 0 : index
    %c0_0 = arith.constant 0 : index
    %0 = vector.load %arg1[%c0, %c0_0] : memref<2x784xf32, #tpu.memory_space<vmem>>, vector<2x784xf32>
    %1 = arith.truncf %0 : vector<2x784xf32> to vector<2x784xbf16>
    %c0_1 = arith.constant 0 : index
    %c0_2 = arith.constant 0 : index
    %2 = vector.load %arg2[%c0_1, %c0_2] : memref<784x20xf32, #tpu.memory_space<vmem>>, vector<784x20xf32>
    %3 = arith.truncf %2 : vector<784x20xf32> to vector<784x20xbf16>
    %cst = arith.constant dense<0.000000e+00> : vector<2x20xf32>
    %4 = tpu.matmul %1, %3, %cst {dimension_numbers = #tpu.dot_dimension_numbers<[1], [0], [0], [1], [0, 0, 1, 1], [], []>} : vector<2x784xbf16>, vector<784x20xbf16>, vector<2x20xf32> -> vector<2x20xf32>
    %c0_3 = arith.constant 0 : index
    %c0_4 = arith.constant 0 : index
    %5 = vector.load %arg3[%c0_3, %c0_4] : memref<1x20xf32, #tpu.memory_space<vmem>>, vector<1x20xf32>
    %6 = vector.broadcast %5 : vector<1x20xf32> to vector<2x20xf32>
    %7 = arith.addf %4, %6 : vector<2x20xf32>
    %cst_5 = arith.constant 0.000000e+00 : f32
    %8 = vector.broadcast %cst_5 : f32 to vector<2x20xf32>
    %9 = arith.maximumf %7, %8 : vector<2x20xf32>
    %c0_6 = arith.constant 0 : index
    %c0_7 = arith.constant 0 : index
    %10 = vector.load %arg4[%c0_6, %c0_7] : memref<20x10xf32, #tpu.memory_space<vmem>>, vector<20x10xf32>
    %cst_8 = arith.constant dense<0.000000e+00> : vector<2x10xf32>
    %11 = tpu.matmul %9, %10, %cst_8 {dimension_numbers = #tpu.dot_dimension_numbers<[1], [0], [0], [1], [0, 0, 1, 1], [], []>} : vector<2x20xf32>, vector<20x10xf32>, vector<2x10xf32> -> vector<2x10xf32>
    %c0_9 = arith.constant 0 : index
    %c0_10 = arith.constant 0 : index
    %12 = vector.load %arg5[%c0_9, %c0_10] : memref<1x10xf32, #tpu.memory_space<vmem>>, vector<1x10xf32>
    %13 = vector.broadcast %12 : vector<1x10xf32> to vector<2x10xf32>
    %14 = arith.addf %11, %13 : vector<2x10xf32>
    %cst_11 = arith.constant dense<0xFF800000> : vector<2xf32>
    %15 = vector.multi_reduction <maximumf>, %14, %cst_11 [1] : vector<2x10xf32> to vector<2xf32>
    %16 = vector.shape_cast %15 : vector<2xf32> to vector<2x1xf32>
    %17 = vector.broadcast %16 : vector<2x1xf32> to vector<2x10xf32>
    %18 = arith.subf %14, %17 : vector<2x10xf32>
    %19 = math.exp %18 : vector<2x10xf32>
    %cst_12 = arith.constant dense<0.000000e+00> : vector<2xf32>
    %20 = vector.multi_reduction <add>, %19, %cst_12 [1] : vector<2x10xf32> to vector<2xf32>
    %21 = vector.shape_cast %20 : vector<2xf32> to vector<2x1xf32>
    %22 = math.log %21 : vector<2x1xf32>
    %23 = vector.broadcast %22 : vector<2x1xf32> to vector<2x10xf32>
    %24 = arith.subf %18, %23 : vector<2x10xf32>
    %c0_13 = arith.constant 0 : index
    %c0_14 = arith.constant 0 : index
    %25 = vector.load %arg6[%c0_13, %c0_14] : memref<2x10xf32, #tpu.memory_space<vmem>>, vector<2x10xf32>
    tpu.vector_store %arg6[%c0_13, %c0_14], %24 {strides = array<i32>} : memref<2x10xf32, #tpu.memory_space<vmem>>, vector<2x10xf32>,
    return
  }
  func.func @transform_0(%arg0: i32) -> (i32, i32) {
    %c0_i32 = arith.constant 0 : i32
    %c0_i32_0 = arith.constant 0 : i32
    return %arg0, %c0_i32 : i32, i32
  }
  func.func @transform_1(%arg0: i32) -> (i32, i32) {
    %c0_i32 = arith.constant 0 : i32
    %c0_i32_0 = arith.constant 0 : i32
    %c0_i32_1 = arith.constant 0 : i32
    return %c0_i32, %c0_i32_0 : i32, i32
  }
  func.func @transform_2(%arg0: i32) -> (i32, i32) {
    %c0_i32 = arith.constant 0 : i32
    %c0_i32_0 = arith.constant 0 : i32
    %c0_i32_1 = arith.constant 0 : i32
    return %c0_i32, %c0_i32_0 : i32, i32
  }
  func.func @transform_3(%arg0: i32) -> (i32, i32) {
    %c0_i32 = arith.constant 0 : i32
    %c0_i32_0 = arith.constant 0 : i32
    %c0_i32_1 = arith.constant 0 : i32
    return %c0_i32, %c0_i32_0 : i32, i32
  }
  func.func @transform_4(%arg0: i32) -> (i32, i32) {
    %c0_i32 = arith.constant 0 : i32
    %c0_i32_0 = arith.constant 0 : i32
    %c0_i32_1 = arith.constant 0 : i32
    return %c0_i32, %c0_i32_0 : i32, i32
  }
  func.func @transform_5(%arg0: i32) -> (i32, i32) {
    %c0_i32 = arith.constant 0 : i32
    %c0_i32_0 = arith.constant 0 : i32
    return %arg0, %c0_i32 : i32, i32
  }
}

</mosaic_0001>

<bundles_post_ra>
// kernel: tpu_custom_call.1
= control target key start
LH: loop header
LB: loop body
LE: loop exit
PB: predicated region body
PF: predicated region fallthrough
CT: control target
= control target key end

     0   :  { %v638_v43 = vmov 1983009808   ;;  %v30_v45 = vlaneseq  ;;  %s1021_s0 = inlined_call_operand.vmem [shape: f32[2,784], index: 0, kind: input, shape index: {}]   ;;  %s1022_s1 = inlined_call_operand.vmem [shape: f32[784,20], index: 1, kind: input, shape index: {}]   ;;  %s1023_s2 = inlined_call_operand.vmem [shape: f32[1,20], index: 2, kind: input, shape index: {}]   ;;  %s1024_s3 = inlined_call_operand.vmem [shape: f32[20,10], index: 3, kind: input, shape index: {}]   ;;  %s1025_s4 = inlined_call_operand.vmem [shape: f32[1,10], index: 4, kind: input, shape index: {}]   ;;  %s1026_s5 = inlined_call_operand.hbm [shape: f32[2,10], index: 5, kind: output, shape index: {}]  }
   0x1   :  { %v89_v0 = vld [vmem:[%s1022_s1 + $0x80] sm:$0xff]  ;;  %v90_v1 = vld [vmem:[%s1022_s1 + $0x88] sm:$0xff]  ;;  %v91_v11 = vld [vmem:[%s1022_s1 + $0x90] sm:$0xff]  ;;  %v28_v44 = vunpack.c.l.s4 %v638_v43 }
   0x2   :  { %v73_v2 = vld [vmem:[%s1022_s1] sm:$0xff]  ;;  %v179_v3 = vpack.c.bf16 %v90_v1, %v89_v0  ;;  %v74_v4 = vld [vmem:[%s1022_s1 + $0x8] sm:$0xff]  ;;  %v92_v13 = vld [vmem:[%s1022_s1 + $0x98] sm:$0xff]  ;;  %v31_v60 = vshrl.u32 %v30_v45, 7 }
   0x3   :  { %v121_v5 = vld [vmem:[%s1022_s1 + $0x180] sm:$0xff]  ;;  %v122_v6 = vld [vmem:[%s1022_s1 + $0x188] sm:$0xff]  ;;  %v171_v7 = vpack.c.bf16 %v74_v4, %v73_v2  ;;  %v75_v14 = vld [vmem:[%s1022_s1 + $0x10] sm:$0xff]  ;;  %v180_v16 = vpack.c.bf16 %v92_v13, %v91_v11  ;;  %v29_v59 = vunpack.c.0.s8 %v28_v44 }
   0x4   :  { %v195_v8 = vpack.c.bf16 %v122_v6, %v121_v5  ;;  %v105_v9 = vld [vmem:[%s1022_s1 + $0x100] sm:$0xff]  ;;  %v106_v10 = vld [vmem:[%s1022_s1 + $0x108] sm:$0xff]  ;;  %513 = vmatprep.subr.bf16.mxu0 %v179_v3  ;;  %v76_v15 = vld [vmem:[%s1022_s1 + $0x18] sm:$0xff] }
   0x5   :  { %v187_v12 = vpack.c.bf16 %v106_v10, %v105_v9  ;;  %514 = vmatpush3.bf16.msra.mxu0 %v171_v7  ;;  %v172_v17 = vpack.c.bf16 %v76_v15, %v75_v14  ;;  %v123_v18 = vld [vmem:[%s1022_s1 + $0x190] sm:$0xff]  ;;  %v124_v19 = vld [vmem:[%s1022_s1 + $0x198] sm:$0xff]  ;;  %v93_v23 = vld [vmem:[%s1022_s1 + $0xa0] sm:$0xff]  ;;  %v817_v10 = vsub.s32 %v29_v59, %v31_v60 }
   0x6   :  { %535 = vmatprep.subr.bf16.mxu1 %v195_v8  ;;  %v107_v20 = vld [vmem:[%s1022_s1 + $0x110] sm:$0xff]  ;;  %v196_v21 = vpack.c.bf16 %v124_v19, %v123_v18  ;;  %v108_v22 = vld [vmem:[%s1022_s1 + $0x118] sm:$0xff]  ;;  %v94_v24 = vld [vmem:[%s1022_s1 + $0xa8] sm:$0xff]  ;;  %515 = vmatprep.subr.bf16.mxu0 %v180_v16 }
   0x7   :  { %536 = vmatpush3.bf16.msra.mxu1 %v187_v12  ;;  %v188_v25 = vpack.c.bf16 %v108_v22, %v107_v20  ;;  %v181_v26 = vpack.c.bf16 %v94_v24, %v93_v23  ;;  %v77_v27 = vld [vmem:[%s1022_s1 + $0x20] sm:$0xff]  ;;  %v78_v28 = vld [vmem:[%s1022_s1 + $0x28] sm:$0xff]  ;;  %v95_v35 = vld [vmem:[%s1022_s1 + $0xb0] sm:$0xff] }
   0x8   :  { %v125_v29 = vld [vmem:[%s1022_s1 + $0x1a0] sm:$0xff]  ;;  %537 = vmatprep.subr.bf16.mxu1 %v196_v21  ;;  %v126_v30 = vld [vmem:[%s1022_s1 + $0x1a8] sm:$0xff]  ;;  %v173_v33 = vpack.c.bf16 %v78_v28, %v77_v27  ;;  %v96_v36 = vld [vmem:[%s1022_s1 + $0xb8] sm:$0xff] }
   0x9   :  { %v109_v31 = vld [vmem:[%s1022_s1 + $0x120] sm:$0xff]  ;;  %v110_v32 = vld [vmem:[%s1022_s1 + $0x128] sm:$0xff]  ;;  %516 = vmatpush3.bf16.msra.mxu0 %v172_v17  ;;  %v197_v34 = vpack.c.bf16 %v126_v30, %v125_v29  ;;  %v79_v37 = vld [vmem:[%s1022_s1 + $0x30] sm:$0xff]  ;;  %v182_v39 = vpack.c.bf16 %v96_v36, %v95_v35 }
   0xa   :  { %517 = vmatprep.subr.bf16.mxu0 %v181_v26  ;;  %v189_v38 = vpack.c.bf16 %v110_v32, %v109_v31  ;;  %v80_v40 = vld [vmem:[%s1022_s1 + $0x38] sm:$0xff]  ;;  %v127_v41 = vld [vmem:[%s1022_s1 + $0x1b0] sm:$0xff]  ;;  %v97_v49 = vld [vmem:[%s1022_s1 + $0xc0] sm:$0xff] }
   0xb   :  { %538 = vmatpush3.bf16.msra.mxu1 %v188_v25  ;;  %v128_v42 = vld [vmem:[%s1022_s1 + $0x1b8] sm:$0xff]  ;;  %v111_v47 = vld [vmem:[%s1022_s1 + $0x130] sm:$0xff]  ;;  %v98_v50 = vld [vmem:[%s1022_s1 + $0xc8] sm:$0xff]  ;;  %v174_v51 = vpack.c.bf16 %v80_v40, %v79_v37 }
   0xc   :  { %539 = vmatprep.subr.bf16.mxu1 %v197_v34  ;;  %v198_v46 = vpack.c.bf16 %v128_v42, %v127_v41  ;;  %v112_v48 = vld [vmem:[%s1022_s1 + $0x138] sm:$0xff]  ;;  %v129_v52 = vld [vmem:[%s1022_s1 + $0x1c0] sm:$0xff]  ;;  %v130_v53 = vld [vmem:[%s1022_s1 + $0x1c8] sm:$0xff]  ;;  %v183_v55 = vpack.c.bf16 %v98_v50, %v97_v49 }
   0xd   :  { %518 = vmatpush3.bf16.msra.mxu0 %v173_v33  ;;  %v190_v54 = vpack.c.bf16 %v112_v48, %v111_v47  ;;  %v81_v56 = vld [vmem:[%s1022_s1 + $0x40] sm:$0xff]  ;;  %v82_v57 = vld [vmem:[%s1022_s1 + $0x48] sm:$0xff]  ;;  %v199_v61 = vpack.c.bf16 %v130_v53, %v129_v52  ;;  %v99_v63 = vld [vmem:[%s1022_s1 + $0xd0] sm:$0xff] }
   0xe   :  { %519 = vmatprep.subr.bf16.mxu0 %v182_v39  ;;  %v113_v58 = vld [vmem:[%s1022_s1 + $0x140] sm:$0xff]  ;;  %v114_v62 = vld [vmem:[%s1022_s1 + $0x148] sm:$0xff]  ;;  %v100_v0 = vld [vmem:[%s1022_s1 + $0xd8] sm:$0xff]  ;;  %v175_v3 = vpack.c.bf16 %v82_v57, %v81_v56 }
   0xf   :  { %540 = vmatpush3.bf16.msra.mxu1 %v189_v38  ;;  %v131_v1 = vld [vmem:[%s1022_s1 + $0x1d0] sm:$0xff]  ;;  %v132_v2 = vld [vmem:[%s1022_s1 + $0x1d8] sm:$0xff]  ;;  %v191_v5 = vpack.c.bf16 %v114_v62, %v113_v58  ;;  %v184_v6 = vpack.c.bf16 %v100_v0, %v99_v63  ;;  %v101_v12 = vld [vmem:[%s1022_s1 + $0xe0] sm:$0xff] }
  0x10   :  { %541 = vmatprep.subr.bf16.mxu1 %v198_v46  ;;  %v83_v4 = vld [vmem:[%s1022_s1 + $0x50] sm:$0xff]  ;;  %v84_v7 = vld [vmem:[%s1022_s1 + $0x58] sm:$0xff]  ;;  %v200_v11 = vpack.c.bf16 %v132_v2, %v131_v1  ;;  %v102_v13 = vld [vmem:[%s1022_s1 + $0xe8] sm:$0xff] }
  0x11   :  { %520 = vmatpush3.bf16.msra.mxu0 %v174_v51  ;;  %v115_v8 = vld [vmem:[%s1022_s1 + $0x150] sm:$0xff]  ;;  %v116_v9 = vld [vmem:[%s1022_s1 + $0x158] sm:$0xff]  ;;  %v133_v14 = vld [vmem:[%s1022_s1 + $0x1e0] sm:$0xff]  ;;  %v176_v16 = vpack.c.bf16 %v84_v7, %v83_v4  ;;  %v185_v20 = vpack.c.bf16 %v102_v13, %v101_v12 }
  0x12   :  { %521 = vmatprep.subr.bf16.mxu0 %v183_v55  ;;  %v134_v15 = vld [vmem:[%s1022_s1 + $0x1e8] sm:$0xff]  ;;  %v192_v17 = vpack.c.bf16 %v116_v9, %v115_v8  ;;  %v85_v18 = vld [vmem:[%s1022_s1 + $0x60] sm:$0xff]  ;;  %v103_v27 = vld [vmem:[%s1022_s1 + $0xf0] sm:$0xff] }
  0x13   :  { %542 = vmatpush3.bf16.msra.mxu1 %v190_v54  ;;  %v22_v19 = vld [vmem:[%s1021_s0] sm:$0xff]  ;;  %v86_v21 = vld [vmem:[%s1022_s1 + $0x68] sm:$0xff]  ;;  %v201_v26 = vpack.c.bf16 %v134_v15, %v133_v14  ;;  %v104_v28 = vld [vmem:[%s1022_s1 + $0xf8] sm:$0xff] }
  0x14   :  { %543 = vmatprep.subr.bf16.mxu1 %v199_v61  ;;  %v117_v22 = vld [vmem:[%s1022_s1 + $0x160] sm:$0xff]  ;;  %v118_v23 = vld [vmem:[%s1022_s1 + $0x168] sm:$0xff]  ;;  %v33_v24 = vrot.slane %v22_v19, %v817_v10  ;;  %v26_v25 = vcombine.high %v22_v19, %v22_v19  ;;  %v135_v29 = vld [vmem:[%s1022_s1 + $0x1f0] sm:$0xff]  ;;  %v177_v33 = vpack.c.bf16 %v86_v21, %v85_v18  ;;  %v186_v35 = vpack.c.bf16 %v104_v28, %v103_v27 }
  0x15   :  { %522 = vmatpush3.bf16.msra.mxu0 %v175_v3  ;;  %v136_v30 = vld [vmem:[%s1022_s1 + $0x1f8] sm:$0xff]  ;;  %v193_v34 = vpack.c.bf16 %v118_v23, %v117_v22  ;;  %v87_v36 = vld [vmem:[%s1022_s1 + $0x70] sm:$0xff]  ;;  %v153_v43 = vld [vmem:[%s1022_s1 + $0x280] sm:$0xff] }
  0x16   :  { %523 = vmatprep.subr.bf16.mxu0 %v184_v6  ;;  %v41_v31 = vcombine.high %v33_v24, %v33_v24  ;;  %v40_v32 = vrot.slane %v26_v25, %v817_v10  ;;  %v88_v37 = vld [vmem:[%s1022_s1 + $0x78] sm:$0xff]  ;;  %v119_v39 = vld [vmem:[%s1022_s1 + $0x170] sm:$0xff]  ;;  %v202_v41 = vpack.c.bf16 %v136_v30, %v135_v29  ;;  %v154_v44 = vld [vmem:[%s1022_s1 + $0x288] sm:$0xff]  ;;  %v66_v53 = vpack.c.bf16 %v33_v24, %v33_v24 }
  0x17   :  { %544 = vmatpush3.bf16.msra.mxu1 %v191_v5  ;;  %v120_v42 = vld [vmem:[%s1022_s1 + $0x178] sm:$0xff]  ;;  %v178_v46 = vpack.c.bf16 %v88_v37, %v87_v36  ;;  %v211_v48 = vpack.c.bf16 %v154_v44, %v153_v43  ;;  %v137_v49 = vld [vmem:[%s1022_s1 + $0x200] sm:$0xff]  ;;  %v138_v50 = vld [vmem:[%s1022_s1 + $0x208] sm:$0xff] }
  0x18   :  { %545 = vmatprep.subr.bf16.mxu1 %v200_v11  ;;  %v67_v38 = vpack.c.bf16 %v41_v31, %v41_v31  ;;  %v42_v40 = vcombine.high %v40_v32, %v40_v32  ;;  %v194_v47 = vpack.c.bf16 %v120_v42, %v119_v39  ;;  %v155_v51 = vld [vmem:[%s1022_s1 + $0x290] sm:$0xff]  ;;  %v156_v52 = vld [vmem:[%s1022_s1 + $0x298] sm:$0xff]  ;;  %v203_v54 = vpack.c.bf16 %v138_v50, %v137_v49  ;;  %v169_v57 = vld [vmem:[%s1022_s1 + $0x300] sm:$0xff] }
  0x19   :  { %524 = vmatpush3.bf16.msra.mxu0 %v176_v16  ;;  %v68_v55 = vpack.c.bf16 %v40_v32, %v40_v32  ;;  %v139_v56 = vld [vmem:[%s1022_s1 + $0x210] sm:$0xff]  ;;  %v170_v58 = vld [vmem:[%s1022_s1 + $0x308] sm:$0xff]  ;;  %v212_v59 = vpack.c.bf16 %v156_v52, %v155_v51  ;;  %v140_v60 = vld [vmem:[%s1022_s1 + $0x218] sm:$0xff] }
  0x1a   :  { %525 = vmatprep.subr.bf16.mxu0 %v185_v20  ;;  %263 = vmatprep.mubr.bf16.mxu0 %v67_v38  ;;  %v69_v45 = vpack.c.bf16 %v42_v40, %v42_v40  ;;  %v219_v61 = vpack.c.bf16 %v170_v58, %v169_v57  ;;  %v23_v62 = vld [vmem:[%s1021_s0 + $0x8] sm:$0x3f] }
  0x1b   :  { %546 = vmatpush3.bf16.msra.mxu1 %v192_v17 }
  0x1c   :  { %547 = vmatprep.subr.bf16.mxu1 %v201_v26  ;;  %303 = vmatprep.mubr.bf16.mxu1 %v69_v45 }
  0x1d   :  { %526 = vmatpush3.bf16.msra.mxu0 %v177_v33 }
  0x1e   :  { %527 = vmatprep.subr.bf16.mxu0 %v186_v35 }
  0x1f   :  { %548 = vmatpush3.bf16.msra.mxu1 %v193_v34 }
  0x20   :  { %549 = vmatprep.subr.bf16.mxu1 %v202_v41 }
  0x21   :  { %528 = vmatpush3.bf16.msra.mxu0 %v178_v46 }
  0x22   :  { %557 = vmatprep.subr.bf16.mxu0 %v211_v48 }
  0x23   :  { %550 = vmatpush3.bf16.msra.mxu1 %v194_v47 }
  0x24   :  { %10 = vsyncpa [#allocation3], 0  ;;  %v157_v63 = vld [vmem:[%s1022_s1 + $0x2a0] sm:$0xff]  ;;  %v158_v0 = vld [vmem:[%s1022_s1 + $0x2a8] sm:$0xff]  ;;  %v639_v1 = vmov 0.0   ;;  %v43_v2 = vcombine.high %v23_v62, %v23_v62  ;;  %v913_v3 = vrot.slane %v23_v62, %v817_v10  ;;  %264 = vmatmul.mubr.bf16.vlgmr.msra.gmra.mrb[0].mxu0 %v66_v53  ;;  %v204_v4 = vpack.c.bf16 %v140_v60, %v139_v56  ;;  %s642_s23 = smov [#allocation2]  }
  0x25   :  { %585 = vmatprep.subr.bf16.mxu1 %v639_v1  ;;  %558 = vmatpush3.bf16.msra.mxu0 %v203_v54  ;;  %v213_v7 = vpack.c.bf16 %v158_v0, %v157_v63  ;;  %v141_v8 = vld [vmem:[%s1022_s1 + $0x220] sm:$0xff]  ;;  %v142_v9 = vld [vmem:[%s1022_s1 + $0x228] sm:$0xff]  ;;  %v159_v11 = vld [vmem:[%s1022_s1 + $0x2b0] sm:$0xff]  ;;  %vm640_vm0 = vmmov 0   ;;  %vm227_vm1 = vcmask 130048   ;;  %v641_v46 = vmov 0.0|0.0  }
  0x26   :  { %304 = vmatmul.mubr.bf16.vlgmr.msra.gmra.mrb[0].mxu1 %v68_v55  ;;  %v57_v5 = vrot.slane %v43_v2, %v817_v10  ;;  %v58_v6 = vcombine.high %v913_v3, %v913_v3  ;;  %559 = vmatprep.subr.bf16.mxu0 %v212_v59  ;;  %v160_v10 = vld [vmem:[%s1022_s1 + $0x2b8] sm:$0xff]  ;;  %v205_v13 = vpack.c.bf16 %v142_v9, %v141_v8  ;;  %v143_v16 = vld [vmem:[%s1022_s1 + $0x230] sm:$0xff]  ;;  %v161_v18 = vld [vmem:[%s1022_s1 + $0x2c0] sm:$0xff]  ;;  %vm406_vm2 = vcmask 1043456  }
  0x27   :  { %586 = vmatpush3.bf16.msra.mxu1 %v219_v61  ;;  %587 = vmatprep.mubr.msk.bf16.mxu1 %vm640_vm0, %v639_v1  ;;  %v214_v15 = vpack.c.bf16 %v160_v10, %v159_v11  ;;  %v144_v17 = vld [vmem:[%s1022_s1 + $0x238] sm:$0xff]  ;;  %v162_v19 = vld [vmem:[%s1022_s1 + $0x2c8] sm:$0xff]  ;;  %v145_v22 = vld [vmem:[%s1022_s1 + $0x240] sm:$0xff]  ;;  %v70_v43 = vpack.c.bf16 %v913_v3, %v913_v3  ;;  %vm402_vm3 = vcmask 162816   ;;  %vm480_vm4 = vcmask 74752  }
  0x28   :  { %v71_v12 = vpack.c.bf16 %v58_v6, %v58_v6  ;;  %v72_v14 = vpack.c.bf16 %v57_v5, %v57_v5  ;;  %v206_v20 = vpack.c.bf16 %v144_v17, %v143_v16  ;;  %v215_v21 = vpack.c.bf16 %v162_v19, %v161_v18  ;;  %v146_v23 = vld [vmem:[%s1022_s1 + $0x248] sm:$0xff]  ;;  %v163_v24 = vld [vmem:[%s1022_s1 + $0x2d0] sm:$0xff]  ;;  %v164_v25 = vld [vmem:[%s1022_s1 + $0x2d8] sm:$0xff]  ;;  %600 = vmatprep.subr.bf16.mxu1 %v641_v46 }
  0x29   :  { %560 = vmatpush3.bf16.msra.mxu0 %v204_v4  ;;  %v207_v26 = vpack.c.bf16 %v146_v23, %v145_v22  ;;  %v216_v27 = vpack.c.bf16 %v164_v25, %v163_v24  ;;  %v147_v28 = vld [vmem:[%s1022_s1 + $0x250] sm:$0xff]  ;;  %v148_v29 = vld [vmem:[%s1022_s1 + $0x258] sm:$0xff]  ;;  %v165_v30 = vld [vmem:[%s1022_s1 + $0x2e0] sm:$0xff] }
  0x2a   :  { %343 = vmatprep.mubr.bf16.mxu0 %v71_v12  ;;  %561 = vmatprep.subr.bf16.mxu0 %v213_v7  ;;  %v166_v31 = vld [vmem:[%s1022_s1 + $0x2e8] sm:$0xff]  ;;  %v208_v32 = vpack.c.bf16 %v148_v29, %v147_v28  ;;  %v149_v34 = vld [vmem:[%s1022_s1 + $0x260] sm:$0xff]  ;;  %v167_v36 = vld [vmem:[%s1022_s1 + $0x2f0] sm:$0xff] }
  0x2b   :  { %v217_v33 = vpack.c.bf16 %v166_v31, %v165_v30  ;;  %v150_v35 = vld [vmem:[%s1022_s1 + $0x268] sm:$0xff]  ;;  %v168_v37 = vld [vmem:[%s1022_s1 + $0x2f8] sm:$0xff]  ;;  %v151_v40 = vld [vmem:[%s1022_s1 + $0x270] sm:$0xff] }
  0x2c   :  { %v209_v38 = vpack.c.bf16 %v150_v35, %v149_v34  ;;  %v218_v39 = vpack.c.bf16 %v168_v37, %v167_v36  ;;  %v152_v41 = vld [vmem:[%s1022_s1 + $0x278] sm:$0xff]  ;;  %v392_v44 = vld [vmem:[%s1024_s3] sm:$0xff]  ;;  %v393_v45 = vld [vmem:[%s1024_s3 + $0x8] sm:$0xff] }
  0x2d   :  { %562 = vmatpush3.bf16.msra.mxu0 %v205_v13  ;;  %v210_v42 = vpack.c.bf16 %v152_v41, %v151_v40  ;;  %v601_v47 = vpack.c.bf16 %v393_v45, %v392_v44  ;;  %v394_v48 = vld [vmem:[%s1024_s3 + $0x10] sm:$0xf]  ;;  %v508_v50 = vld [vmem:[%s1023_s2] ss:$0 sm:$0xff] }
  0x2e   :  { %588 = vmatmul.mubr.msk.bf16.vlgmr.msra.gmra.mrb[4].mxu1 %vm227_vm1, %v72_v14  ;;  %563 = vmatprep.subr.bf16.mxu0 %v214_v15  ;;  %v510_v11 = vld [vmem:[%s1025_s4] ss:$0 sm:$0xff]  ;;  %s500_s4 = sshll.u32 %s642_s23, 4  ;;  %s501_s4 = int_to_ptr.vmem [resolvable:$true] %s500_s4 }
  0x2f   :  { %597 = vmatprep.mubr.msk.f32.mxu1 %vm640_vm0, %v639_v1  ;;  %602 = vmatpush3.bf16.msra.mxu1 %v601_v47  ;;  %s614_s0 = scalar_lea.vmem %s501_s4, 32  ;;  %p619_p1 = scmp.lt.s32.totalorder %s501_s4, %s501_s4 }
  0x30   :  { %595 = vmatprep.subr.mxu1 %v639_v1  ;;  %p615_p0 = scmp.ne.s32.totalorder %s501_s4, %s614_s0  ;;  %p620_p2 = scmp.lt.s32.totalorder %s614_s0, %s614_s0 }
  0x31   :  { %564 = vmatpush3.bf16.msra.mxu0 %v206_v20 }
  0x32   :  { %565 = vmatprep.subr.bf16.mxu0 %v215_v21  ;;  %p621_p3 = por %p620_p2, %p619_p1 }
  0x33   :  { %596 = vmatpush3.msk.msra.mxu1 %vm406_vm2, %v394_v48 }
  0x34   :  { %p622_p4 = pnand %p621_p3, %p615_p0 }
  0x35   :  { %566 = vmatpush3.bf16.msra.mxu0 %v207_v26 }
  0x36   :  { %567 = vmatprep.subr.bf16.mxu0 %v216_v27 }
  0x39   :  { %568 = vmatpush3.bf16.msra.mxu0 %v208_v32 }
  0x3a   :  { %569 = vmatprep.subr.bf16.mxu0 %v217_v33 }
  0x3d   :  { %570 = vmatpush3.bf16.msra.mxu0 %v209_v38 }
  0x3e   :  { %571 = vmatprep.subr.bf16.mxu0 %v218_v39 }
  0x41   :  { %572 = vmatpush3.bf16.msra.mxu0 %v210_v42 }
  0x44   :  { %344 = vmatmul.mubr.bf16.vlgmr.msra.gmra.mrb[4].mxu0 %v70_v43 }
  0xf7   :  { %v529_v49 = vpop.f32.mrb[0].mxu0 }
  0xf8   :  { %v530_v51 = vpop.f32.mrb[1].mxu0 }
  0xf9   :  { %v551_v52 = vpop.f32.mrb[0].mxu1  ;;  %v531_v53 = vadd.f32 %v530_v51, %v529_v49  ;;  %v532_v54 = vpop.f32.mrb[2].mxu0 }
  0xfa   :  { %v552_v55 = vpop.f32.mrb[1].mxu1  ;;  %v533_v56 = vpop.f32.mrb[3].mxu0 }
  0xfb   :  { %v553_v57 = vadd.f32 %v552_v55, %v551_v52  ;;  %v554_v58 = vpop.f32.mrb[2].mxu1  ;;  %v266_v59 = vadd.f32 %v531_v53, %v508_v50 }
  0xfc   :  { %v555_v60 = vpop.f32.mrb[3].mxu1 }
  0xfd   :  { %v306_v61 = vadd.f32 %v553_v57, %v266_v59 }
 0x101   :  { %v385_v62 = vpop.f32.mrb[4].mxu1 }
 0x102   :  { %v589_v63 = vpop.f32.mrb[5].mxu1 }
 0x103   :  { %v388_v0 = vpop.f32.mrb[6].mxu1 }
 0x104   :  { %v590_v1 = vpop.f32.mrb[7].mxu1 }
 0x117   :  { %v573_v2 = vpop.f32.mrb[4].mxu0 }
 0x118   :  { %v574_v3 = vpop.f32.mrb[5].mxu0 }
 0x119   :  { %v575_v4 = vadd.f32 %v574_v3, %v573_v2  ;;  %v576_v5 = vpop.f32.mrb[6].mxu0 }
 0x11a   :  { %v577_v6 = vpop.f32.mrb[7].mxu0 }
 0x11b   :  { %v346_v7 = vadd.f32 %v575_v4, %v306_v61 }
 0x11d   :  { %v386_v8 = vadd.f32 %v385_v62, %v346_v7 }
 0x11f   :  { %v391_v9 = vmax.f32 %v386_v8, 0.0 }
 0x121   :  { %598 = vmatmul.mubr.msk.f32.vlgmr.msra.gmra.mrb[8].mxu1 %vm402_vm3, %v391_v9 }
 0x1f4   :  { %v476_v10 = vpop.f32.mrb[8].mxu1 }
 0x1f5   :  { %v477_v12 = vadd.f32 %v510_v11, %v476_v10  ;;  %v599_v13 = vpop.f32.mrb[9].mxu1 }
 0x1f7   :  { %v481_v14 = vsel %vm480_vm4, %v477_v12, -inf }
 0x1f8   :  { %482 = vmax.xlane.f32.xlu0 %v481_v14 }
 0x285   :  { %v483_v15 = vpop.xlane.xlu0 %482 }
 0x286   :  { %v484_v16 = vsub.f32 %v477_v12, %v483_v15 }
 0x288   :  { %v485_v17 = vmul.f32 1.442695, %v484_v16 }
 0x28a   :  { %610 = vpow2.f32 %v485_v17 }
 0x294   :  { %v611_v18 = vpop.eup %610 }
 0x295   :  { %v487_v19 = vsel %vm480_vm4, %v611_v18, 0.0 }
 0x296   :  { %488 = vadd.xlane.f32.xlu0 %v487_v19 }
 0x323   :  { %v489_v20 = vpop.xlane.xlu0 %488 }
 0x324   :  { %612 = vlog2.f32 %v489_v20 }
 0x32e   :  { %v613_v21 = vpop.eup %612 }
 0x32f   :  { %v491_v22 = vmul.f32 0.6931472, %v613_v21 }
 0x331   :  { %v492_v23 = vsub.f32 %v484_v16, %v491_v22 }
 0x333   :  { %493 = vst.msk [vmem:[#allocation2] sm:$0x3] %vm480_vm4, %v492_v23 }
 0x334   :  { %625 = shalt.err (!%p622_p4)
}
 0x335   :  { %s626_s26 = scalar_lea.hbm %s1026_s5, 32 }
 0x336   :  { %p627_p5 = scmp.ne.s32.totalorder %s1026_s5, %s626_s26  ;;  %p630_p6 = scmp.lt.u32.totalorder %s626_s26, %s1026_s5 }
 0x338   :  { %p632_p7 = pnand %p630_p6, %p627_p5 }
 0x33a   :  { %635 = shalt.err (!%p632_p7)
}
 0x33b   :  { %503 = dma.vmem_to_hbm [thread:$0]  %s501_s4, 32, %s1026_s5, [#allocation3]  }
 0x33c   :  { %636 = dma.done.wait [#allocation3], 32  }
 0x33d   :  { %637 = vsyncadd [#allocation3], 4294967264 }
 0x33e   :  { %507 = vsyncpa [#allocation3], 1 }

</bundles_post_ra>
